<compile_context>
chip_gen: v5e
topology: v5e:2x2
jax: 0.10.0
libtpu: 0.0.40
codegen_flags: <defaults>
</compile_context>

<pallas_src>
import functools

import jax
import jax.numpy as jnp
import numpy as np
from jax import lax
from jax.experimental import pallas as pl
from jax.experimental.pallas import tpu as pltpu

LANES = 128


def _cdiv(a, b):
    return -(-a // b)


def _round_up(a, m):
    return _cdiv(a, m) * m


def _sublane_multiple(*dtypes):
    """Sublane multiple required by the narrowest input dtype (8/16/32)."""
    worst = 8
    for dt in dtypes:
        worst = max(worst, {4: 8, 2: 16, 1: 32}.get(jnp.dtype(dt).itemsize, 8))
    return worst


def _partial_sums_kernel(o_ref, t_ref, out_ref, *, smooth, n_steps, tiles_needed,
                         row_tile, chunk_rows, n_valid, binary_targets):
    """Accumulate [sum(o*t), sum(o), sum(t), sum(bce)] into the (1,4,8,128) block."""
    p = pl.program_id(0)          # "parallel" axis (megacore / v7x dual-TC)
    i = pl.program_id(1)          # "arbitrary" axis; output block resident across it

    @pl.when(i == 0)
    def _init():
        out_ref[...] = jnp.zeros_like(out_ref)

    blk = p * n_steps + i          # logical (un-clamped) block index
    last_blk = tiles_needed - 1
    full_rows = n_valid // LANES                 # rows with all 128 lanes valid
    rem_lanes = n_valid - full_rows * LANES      # 0..127 valid lanes in row `full_rows`

    def bce_of(o, t):
        if binary_targets:
            # Exact for t in {0,1}; one EUP log per element instead of two.
            return -jnp.log(jnp.where(t >= 0.5, o + smooth, (1.0 + smooth) - o))
        return -(t * jnp.log(o + smooth) + (1.0 - t) * jnp.log(1.0 - o + smooth))

    def sub_reduce(x):
        # Sublane-group reduction only: (chunk,128) -> (chunk//8,8,128) -> (8,128).
        # Each (8,128) slice is exactly one vreg of the source: pure VPU adds, no XLU.
        return jnp.sum(x.reshape(chunk_rows // 8, 8, LANES), axis=0)

    def chunk_body(c, carry, *, masked):
        acc_ot, acc_o, acc_t, acc_b = carry
        start = pl.multiple_of(c * chunk_rows, chunk_rows)
        o = o_ref[pl.ds(start, chunk_rows), :].astype(jnp.float32)
        t = t_ref[pl.ds(start, chunk_rows), :].astype(jnp.float32)
        valid = None
        if masked:
            row0 = last_blk * row_tile + start   # global row of this chunk's first row
            row_ids = row0 + lax.broadcasted_iota(jnp.int32, (chunk_rows, LANES), 0)
            if rem_lanes == 0:
                valid = row_ids < full_rows
            else:
                lane_ids = lax.broadcasted_iota(jnp.int32, (chunk_rows, LANES), 1)
                valid = (row_ids < full_rows) | (
                    (row_ids == full_rows) & (lane_ids < rem_lanes))
            o = jnp.where(valid, o, 0.0)
            t = jnp.where(valid, t, 0.0)
        bce = bce_of(o, t)
        if masked:
            bce = jnp.where(valid, bce, 0.0)     # padded/garbage lanes contribute 0
        return (acc_ot + sub_reduce(o * t), acc_o + sub_reduce(o),
                acc_t + sub_reduce(t), acc_b + sub_reduce(bce))

    def run_block(n_chunks, masked):
        zeros = jnp.zeros((8, LANES), jnp.float32)
        accs = lax.fori_loop(0, n_chunks,
                             functools.partial(chunk_body, masked=masked),
                             (zeros, zeros, zeros, zeros))
        out_ref[0, 0] += accs[0]
        out_ref[0, 1] += accs[1]
        out_ref[0, 2] += accs[2]
        out_ref[0, 3] += accs[3]

    if tiles_needed > 1:
        # Interior blocks: fully valid, unmasked fast path.
        @pl.when(blk < last_blk)
        def _full():
            run_block(row_tile // chunk_rows, masked=False)

    # Last block: may extend past the (rows,128) array -> mask by global index.
    rows = _cdiv(n_valid, LANES)
    tail_chunks = _cdiv(rows - last_blk * row_tile, chunk_rows)

    @pl.when(blk == last_blk)
    def _tail():
        run_block(tail_chunks, masked=True)
    # blk > last_blk (clamped duplicate steps on the final parallel slice): no-op.


def tversky_focal_loss(outputs, targets, *, tversky_weight=1.0, focal_weight=1.0,
                       alpha=0.5, beta=0.5, gamma=2.0, delta=0.25, smooth=1e-6,
                       binary_targets=False, row_tile=4096, chunk_rows=512, n_par=2):
    """outputs/targets: any shape (e.g. NCHW probabilities in [0, 1]).

    Set binary_targets=True only when targets are hard 0/1 masks (exact, faster).
    """
    o_flat = jnp.ravel(outputs)
    t_flat = jnp.ravel(targets)
    n_valid = int(o_flat.shape[0])
    if n_valid == 0:
        raise ValueError("tversky_focal_loss: empty input")

    sub_mult = _sublane_multiple(o_flat.dtype, t_flat.dtype)

    rows = _cdiv(n_valid, LANES)
    pad = rows * LANES - n_valid
    if pad:
        # TODO(synk): only a ragged (numel % 128 != 0) tail hits this one pad copy;
        # the common case streams the original buffers copy-free.
        o_flat = jnp.pad(o_flat, (0, pad))
        t_flat = jnp.pad(t_flat, (0, pad))
    o2 = o_flat.reshape(rows, LANES)   # contiguous reshape: no HBM copy
    t2 = t_flat.reshape(rows, LANES)

    # ---- static tiling -------------------------------------------------------
    row_tile = max(int(row_tile), sub_mult)
    row_tile = min(row_tile, _round_up(rows, sub_mult))
    row_tile = _round_up(row_tile, sub_mult)
    chunk_rows = _round_up(min(max(int(chunk_rows), sub_mult), row_tile), sub_mult)
    row_tile = _round_up(row_tile, chunk_rows)

    tiles_needed = _cdiv(rows, row_tile)
    n_par = max(1, int(n_par))
    if tiles_needed < 2 * n_par:          # not worth splitting tiny inputs
        n_par = 1
    n_steps = _cdiv(tiles_needed, n_par)
    last = tiles_needed - 1

    kernel = functools.partial(
        _partial_sums_kernel, smooth=float(smooth), n_steps=n_steps,
        tiles_needed=tiles_needed, row_tile=row_tile, chunk_rows=chunk_rows,
        n_valid=n_valid, binary_targets=bool(binary_targets))

    # Clamp the block index so duplicate trailing steps re-point at the last
    # block (same index as previous step -> DMA skipped) instead of going OOB.
    in_blk = pl.BlockSpec((row_tile, LANES),
                          lambda p_, i_: (jnp.minimum(p_ * n_steps + i_, last), 0))
    out_blk = pl.BlockSpec((1, 4, 8, LANES), lambda p_, i_: (p_, 0, 0, 0))

    n_elems = rows * LANES
    cost = pl.CostEstimate(
        flops=12 * n_elems,
        transcendentals=(1 if binary_targets else 2) * n_elems,
        bytes_accessed=n_elems * (o2.dtype.itemsize + t2.dtype.itemsize)
        + n_par * 4 * 8 * LANES * 4,
    )

    partials = pl.pallas_call(
        kernel,
        out_shape=jax.ShapeDtypeStruct((n_par, 4, 8, LANES), jnp.float32),
        grid_spec=pltpu.PrefetchScalarGridSpec(
            num_scalar_prefetch=0,
            grid=(n_par, n_steps),
            in_specs=[in_blk, in_blk],
            out_specs=out_blk,
        ),
        compiler_params=pltpu.CompilerParams(
            dimension_semantics=("parallel", "arbitrary")),
        cost_estimate=cost,
    )(o2, t2)

    # ---- tiny O(1) epilogue in plain JAX -------------------------------------
    sums = jnp.sum(partials, axis=(0, 2, 3))   # (4,)
    tp = sums[0]
    fp = sums[1] - tp          # sum((1-t)*o) = sum(o) - sum(o*t)
    fn = sums[2] - tp          # sum(t*(1-o)) = sum(t) - sum(o*t)
    bce_mean = sums[3] / float(n_valid)        # padded lanes masked in-kernel

    tversky_idx = (tp + smooth) / (tp + alpha * fp + beta * fn + smooth)
    base = 1.0 - jnp.exp(-bce_mean)
    if float(gamma) == 2.0:
        powed = base * base    # avoid pow -> exp/log round-trip for default gamma
    else:
        powed = base ** gamma
    focal_idx = delta * powed * bce_mean

    return (tversky_weight * (1.0 - tversky_idx) + focal_weight * focal_idx) / 2.0


def _reference(outputs, targets, *, tversky_weight=1.0, focal_weight=1.0,
               alpha=0.5, beta=0.5, gamma=2.0, delta=0.25, smooth=1e-6):
    o = np.asarray(outputs, dtype=np.float64).ravel()
    t = np.asarray(targets, dtype=np.float64).ravel()
    tp = np.sum(o * t)
    fp = np.sum((1.0 - t) * o)
    fn = np.sum(t * (1.0 - o))
    tversky = (tp + smooth) / (tp + alpha * fp + beta * fn + smooth)
    bce = np.mean(-(t * np.log(o + smooth) + (1.0 - t) * np.log(1.0 - o + smooth)))
    focal = delta * (1.0 - np.exp(-bce)) ** gamma * bce
    return (tversky_weight * (1.0 - tversky) + focal_weight * focal) / 2.0


if __name__ == "__main__":
    key = jax.random.PRNGKey(0)
    k1, k2, k3, k4, k5, k6 = jax.random.split(key, 6)

    # 1) NCHW segmentation-style inputs: probabilities + hard binary targets.
    x1 = jax.random.uniform(k1, (2, 4, 16, 16), dtype=jnp.float32)
    y1 = (jax.random.uniform(k2, (2, 4, 16, 16)) > 0.5).astype(jnp.float32)
    l1 = tversky_focal_loss(x1, y1, binary_targets=True)
    jax.block_until_ready(l1)
    r1 = _reference(np.asarray(x1), np.asarray(y1))
    assert np.allclose(float(l1), float(r1), rtol=1e-4, atol=1e-6), (float(l1), r1)

    # 2) Soft labels -> general two-log BCE path (module's exact semantics).
    y1s = jax.random.uniform(k3, (2, 4, 16, 16), dtype=jnp.float32)
    l2 = tversky_focal_loss(x1, y1s)
    jax.block_until_ready(l2)
    r2 = _reference(np.asarray(x1), np.asarray(y1s))
    assert np.allclose(float(l2), float(r2), rtol=1e-4, atol=1e-6), (float(l2), r2)

    # 3) Multi-tile path: several grid steps, a partial last block, and a
    #    clamped duplicate step (5 tiles on a (2,3) grid).
    x3 = jax.random.uniform(k4, (2, 4, 32, 36), dtype=jnp.float32)
    y3 = (jax.random.uniform(k5, (2, 4, 32, 36)) > 0.5).astype(jnp.float32)
    l3 = tversky_focal_loss(x3, y3, binary_targets=True,
                            row_tile=16, chunk_rows=8, n_par=2)
    jax.block_until_ready(l3)
    r3 = _reference(np.asarray(x3), np.asarray(y3))
    assert np.allclose(float(l3), float(r3), rtol=1e-4, atol=1e-6), (float(l3), r3)

    # 4) Ragged tail (numel % 128 != 0) exercising the in-kernel lane mask.
    x4 = jax.random.uniform(k6, (1, 1, 25, 40), dtype=jnp.float32)
    y4 = (x4 > 0.5).astype(jnp.float32)
    l4 = tversky_focal_loss(x4, y4, binary_targets=True)
    jax.block_until_ready(l4)
    r4 = _reference(np.asarray(x4), np.asarray(y4))
    assert np.allclose(float(l4), float(r4), rtol=1e-4, atol=1e-6), (float(l4), r4)

    print("KERNEL_OK")
</pallas_src>

<mosaic_0001>
module attributes {stable_mosaic.version = 11 : i64} {
  func.func @_partial_sums_kernel(%arg0: i32, %arg1: i32, %arg2: memref<16x128xf32, #tpu.memory_space<vmem>>, %arg3: memref<16x128xf32, #tpu.memory_space<vmem>>, %arg4: memref<1x4x8x128xf32, #tpu.memory_space<vmem>>) attributes {dimension_semantics = [#tpu.dimension_semantics<parallel>, #tpu.dimension_semantics<arbitrary>], iteration_bounds = array<i64: 1, 1>, scalar_prefetch = 0 : i64, scratch_operands = 0 : i64, tpu.core_type = #tpu.core_type<tc>, window_params = [{transform_indices = @transform_0, window_bounds = array<i64: 16, 128>}, {transform_indices = @transform_1, window_bounds = array<i64: 16, 128>}, {transform_indices = @transform_2, window_bounds = array<i64: 1, 4, 8, 128>}]} {
    %c0_i32 = arith.constant 0 : i32
    %0 = arith.cmpi eq, %arg1, %c0_i32 : i32
    %1 = arith.extui %0 : i1 to i32
    %c0_i32_0 = arith.constant 0 : i32
    %2 = arith.cmpi ne, %1, %c0_i32_0 : i32
    scf.if %2 {
      %cst = arith.constant 0.000000e+00 : f32
      %8 = vector.broadcast %cst : f32 to vector<1x4x8x128xf32>
      %c0 = arith.constant 0 : index
      %c0_3 = arith.constant 0 : index
      %c0_4 = arith.constant 0 : index
      %c0_5 = arith.constant 0 : index
      %9 = vector.load %arg4[%c0, %c0_3, %c0_4, %c0_5] : memref<1x4x8x128xf32, #tpu.memory_space<vmem>>, vector<1x4x8x128xf32>
      tpu.vector_store %arg4[%c0, %c0_3, %c0_4, %c0_5], %8 {strides = array<i32>} : memref<1x4x8x128xf32, #tpu.memory_space<vmem>>, vector<1x4x8x128xf32>,
    } else {
    }
    %c1_i32 = arith.constant 1 : i32
    %3 = arith.muli %arg0, %c1_i32 : i32
    %4 = arith.addi %3, %arg1 : i32
    %c0_i32_1 = arith.constant 0 : i32
    %5 = arith.cmpi eq, %4, %c0_i32_1 : i32
    %6 = arith.extui %5 : i1 to i32
    %c0_i32_2 = arith.constant 0 : i32
    %7 = arith.cmpi ne, %6, %c0_i32_2 : i32
    scf.if %7 {
      %cst = arith.constant 0.000000e+00 : f32
      %8 = vector.broadcast %cst : f32 to vector<8x128xf32>
      %c0_i32_3 = arith.constant 0 : i32
      %c16_i32 = arith.constant 16 : i32
      %9 = arith.muli %c0_i32_3, %c16_i32 : i32
      %10 = tpu.assume_multiple %9, 16 : i32
      %11 = arith.index_cast %10 : i32 to index
      %c0 = arith.constant 0 : index
      %12 = vector.load %arg2[%11, %c0] : memref<16x128xf32, #tpu.memory_space<vmem>>, vector<16x128xf32>
      %13 = arith.index_cast %10 : i32 to index
      %c0_4 = arith.constant 0 : index
      %14 = vector.load %arg3[%13, %c0_4] : memref<16x128xf32, #tpu.memory_space<vmem>>, vector<16x128xf32>
      %c0_i32_5 = arith.constant 0 : i32
      %15 = arith.addi %c0_i32_5, %10 : i32
      %16 = tpu.iota {dimensions = array<i32: 0>} : vector<16x128xi32>
      %17 = vector.broadcast %15 : i32 to vector<16x128xi32>
      %18 = arith.addi %17, %16 : vector<16x128xi32>
      %c16_i32_6 = arith.constant 16 : i32
      %19 = vector.broadcast %c16_i32_6 : i32 to vector<16x128xi32>
      %20 = arith.cmpi slt, %18, %19 : vector<16x128xi32>
      %cst_7 = arith.constant 0.000000e+00 : f32
      %21 = vector.broadcast %cst_7 : f32 to vector<16x128xf32>
      %22 = arith.select %20, %12, %21 : vector<16x128xi1>, vector<16x128xf32>
      %cst_8 = arith.constant 0.000000e+00 : f32
      %23 = vector.broadcast %cst_8 : f32 to vector<16x128xf32>
      %24 = arith.select %20, %14, %23 : vector<16x128xi1>, vector<16x128xf32>
      %cst_9 = arith.constant 5.000000e-01 : f32
      %25 = vector.broadcast %cst_9 : f32 to vector<16x128xf32>
      %26 = arith.cmpf oge, %24, %25 : vector<16x128xf32>
      %cst_10 = arith.constant 9.99999997E-7 : f32
      %27 = vector.broadcast %cst_10 : f32 to vector<16x128xf32>
      %28 = arith.addf %22, %27 : vector<16x128xf32>
      %cst_11 = arith.constant 1.00000095 : f32
      %29 = vector.broadcast %cst_11 : f32 to vector<16x128xf32>
      %30 = arith.subf %29, %22 : vector<16x128xf32>
      %31 = arith.select %26, %28, %30 : vector<16x128xi1>, vector<16x128xf32>
      %32 = math.log %31 : vector<16x128xf32>
      %cst_12 = arith.constant 0.000000e+00 : f32
      %33 = vector.broadcast %cst_12 : f32 to vector<16x128xf32>
      %34 = arith.subf %33, %32 : vector<16x128xf32>
      %cst_13 = arith.constant 0.000000e+00 : f32
      %35 = vector.broadcast %cst_13 : f32 to vector<16x128xf32>
      %36 = arith.select %20, %34, %35 : vector<16x128xi1>, vector<16x128xf32>
      %37 = arith.mulf %22, %24 : vector<16x128xf32>
      %38 = vector.shape_cast %37 : vector<16x128xf32> to vector<2x8x128xf32>
      %cst_14 = arith.constant dense<0.000000e+00> : vector<8x128xf32>
      %39 = vector.multi_reduction <add>, %38, %cst_14 [0] : vector<2x8x128xf32> to vector<8x128xf32>
      %40 = arith.addf %8, %39 : vector<8x128xf32>
      %41 = vector.shape_cast %22 : vector<16x128xf32> to vector<2x8x128xf32>
      %cst_15 = arith.constant dense<0.000000e+00> : vector<8x128xf32>
      %42 = vector.multi_reduction <add>, %41, %cst_15 [0] : vector<2x8x128xf32> to vector<8x128xf32>
      %43 = arith.addf %8, %42 : vector<8x128xf32>
      %44 = vector.shape_cast %24 : vector<16x128xf32> to vector<2x8x128xf32>
      %cst_16 = arith.constant dense<0.000000e+00> : vector<8x128xf32>
      %45 = vector.multi_reduction <add>, %44, %cst_16 [0] : vector<2x8x128xf32> to vector<8x128xf32>
      %46 = arith.addf %8, %45 : vector<8x128xf32>
      %47 = vector.shape_cast %36 : vector<16x128xf32> to vector<2x8x128xf32>
      %cst_17 = arith.constant dense<0.000000e+00> : vector<8x128xf32>
      %48 = vector.multi_reduction <add>, %47, %cst_17 [0] : vector<2x8x128xf32> to vector<8x128xf32>
      %49 = arith.addf %8, %48 : vector<8x128xf32>
      %c1_i32_18 = arith.constant 1 : i32
      %c0_19 = arith.constant 0 : index
      %c0_20 = arith.constant 0 : index
      %c0_21 = arith.constant 0 : index
      %c0_22 = arith.constant 0 : index
      %50 = vector.load %arg4[%c0_19, %c0_20, %c0_21, %c0_22] : memref<1x4x8x128xf32, #tpu.memory_space<vmem>>, vector<1x1x8x128xf32>
      %51 = vector.shape_cast %50 : vector<1x1x8x128xf32> to vector<8x128xf32>
      %52 = arith.addf %51, %40 : vector<8x128xf32>
      %c0_23 = arith.constant 0 : index
      %c0_24 = arith.constant 0 : index
      %c0_25 = arith.constant 0 : index
      %c0_26 = arith.constant 0 : index
      %53 = vector.load %arg4[%c0_23, %c0_24, %c0_25, %c0_26] : memref<1x4x8x128xf32, #tpu.memory_space<vmem>>, vector<1x1x8x128xf32>
      %54 = vector.shape_cast %53 : vector<1x1x8x128xf32> to vector<8x128xf32>
      %55 = vector.shape_cast %52 : vector<8x128xf32> to vector<1x1x8x128xf32>
      tpu.vector_store %arg4[%c0_23, %c0_24, %c0_25, %c0_26], %55 {strides = array<i32>} : memref<1x4x8x128xf32, #tpu.memory_space<vmem>>, vector<1x1x8x128xf32>,
      %c0_27 = arith.constant 0 : index
      %c1 = arith.constant 1 : index
      %c0_28 = arith.constant 0 : index
      %c0_29 = arith.constant 0 : index
      %56 = vector.load %arg4[%c0_27, %c1, %c0_28, %c0_29] : memref<1x4x8x128xf32, #tpu.memory_space<vmem>>, vector<1x1x8x128xf32>
      %57 = vector.shape_cast %56 : vector<1x1x8x128xf32> to vector<8x128xf32>
      %58 = arith.addf %57, %43 : vector<8x128xf32>
      %c0_30 = arith.constant 0 : index
      %c1_31 = arith.constant 1 : index
      %c0_32 = arith.constant 0 : index
      %c0_33 = arith.constant 0 : index
      %59 = vector.load %arg4[%c0_30, %c1_31, %c0_32, %c0_33] : memref<1x4x8x128xf32, #tpu.memory_space<vmem>>, vector<1x1x8x128xf32>
      %60 = vector.shape_cast %59 : vector<1x1x8x128xf32> to vector<8x128xf32>
      %61 = vector.shape_cast %58 : vector<8x128xf32> to vector<1x1x8x128xf32>
      tpu.vector_store %arg4[%c0_30, %c1_31, %c0_32, %c0_33], %61 {strides = array<i32>} : memref<1x4x8x128xf32, #tpu.memory_space<vmem>>, vector<1x1x8x128xf32>,
      %c0_34 = arith.constant 0 : index
      %c2 = arith.constant 2 : index
      %c0_35 = arith.constant 0 : index
      %c0_36 = arith.constant 0 : index
      %62 = vector.load %arg4[%c0_34, %c2, %c0_35, %c0_36] : memref<1x4x8x128xf32, #tpu.memory_space<vmem>>, vector<1x1x8x128xf32>
      %63 = vector.shape_cast %62 : vector<1x1x8x128xf32> to vector<8x128xf32>
      %64 = arith.addf %63, %46 : vector<8x128xf32>
      %c0_37 = arith.constant 0 : index
      %c2_38 = arith.constant 2 : index
      %c0_39 = arith.constant 0 : index
      %c0_40 = arith.constant 0 : index
      %65 = vector.load %arg4[%c0_37, %c2_38, %c0_39, %c0_40] : memref<1x4x8x128xf32, #tpu.memory_space<vmem>>, vector<1x1x8x128xf32>
      %66 = vector.shape_cast %65 : vector<1x1x8x128xf32> to vector<8x128xf32>
      %67 = vector.shape_cast %64 : vector<8x128xf32> to vector<1x1x8x128xf32>
      tpu.vector_store %arg4[%c0_37, %c2_38, %c0_39, %c0_40], %67 {strides = array<i32>} : memref<1x4x8x128xf32, #tpu.memory_space<vmem>>, vector<1x1x8x128xf32>,
      %c0_41 = arith.constant 0 : index
      %c3 = arith.constant 3 : index
      %c0_42 = arith.constant 0 : index
      %c0_43 = arith.constant 0 : index
      %68 = vector.load %arg4[%c0_41, %c3, %c0_42, %c0_43] : memref<1x4x8x128xf32, #tpu.memory_space<vmem>>, vector<1x1x8x128xf32>
      %69 = vector.shape_cast %68 : vector<1x1x8x128xf32> to vector<8x128xf32>
      %70 = arith.addf %69, %49 : vector<8x128xf32>
      %c0_44 = arith.constant 0 : index
      %c3_45 = arith.constant 3 : index
      %c0_46 = arith.constant 0 : index
      %c0_47 = arith.constant 0 : index
      %71 = vector.load %arg4[%c0_44, %c3_45, %c0_46, %c0_47] : memref<1x4x8x128xf32, #tpu.memory_space<vmem>>, vector<1x1x8x128xf32>
      %72 = vector.shape_cast %71 : vector<1x1x8x128xf32> to vector<8x128xf32>
      %73 = vector.shape_cast %70 : vector<8x128xf32> to vector<1x1x8x128xf32>
      tpu.vector_store %arg4[%c0_44, %c3_45, %c0_46, %c0_47], %73 {strides = array<i32>} : memref<1x4x8x128xf32, #tpu.memory_space<vmem>>, vector<1x1x8x128xf32>,
    } else {
    }
    return
  }
  func.func @transform_0(%arg0: i32, %arg1: i32) -> (i32, i32) {
    %c1_i32 = arith.constant 1 : i32
    %0 = arith.muli %arg0, %c1_i32 : i32
    %1 = arith.addi %0, %arg1 : i32
    %c0_i32 = arith.constant 0 : i32
    %2 = arith.minsi %1, %c0_i32 : i32
    %c0_i32_0 = arith.constant 0 : i32
    %c0_i32_1 = arith.constant 0 : i32
    return %2, %c0_i32_0 : i32, i32
  }
  func.func @transform_1(%arg0: i32, %arg1: i32) -> (i32, i32) {
    %c1_i32 = arith.constant 1 : i32
    %0 = arith.muli %arg0, %c1_i32 : i32
    %1 = arith.addi %0, %arg1 : i32
    %c0_i32 = arith.constant 0 : i32
    %2 = arith.minsi %1, %c0_i32 : i32
    %c0_i32_0 = arith.constant 0 : i32
    %c0_i32_1 = arith.constant 0 : i32
    return %2, %c0_i32_0 : i32, i32
  }
  func.func @transform_2(%arg0: i32, %arg1: i32) -> (i32, i32, i32, i32) {
    %c0_i32 = arith.constant 0 : i32
    %c0_i32_0 = arith.constant 0 : i32
    %c0_i32_1 = arith.constant 0 : i32
    %c0_i32_2 = arith.constant 0 : i32
    return %arg0, %c0_i32, %c0_i32_0, %c0_i32_1 : i32, i32, i32, i32
  }
}

</mosaic_0001>

<bundles_post_ra>
// kernel: tpu_custom_call.1
= control target key start
LH: loop header
LB: loop body
LE: loop exit
PB: predicated region body
PF: predicated region fallthrough
CT: control target
= control target key end

     0   :  { %7 = vsyncpa [#allocation3], 0  ;;  %s284_s0 = inlined_call_operand.hbm [shape: f32[16,128], index: 0, kind: input, shape index: {}]   ;;  %s285_s1 = inlined_call_operand.hbm [shape: f32[16,128], index: 1, kind: input, shape index: {}]   ;;  %s286_s2 = inlined_call_operand.hbm [shape: f32[1,4,8,128], index: 2, kind: output, shape index: {}]  }
   0x1   :  { %8 = vsyncpa [#allocation6], 0 }
   0x2   :  { %9 = vsyncpa [#allocation4], 0  ;;  %s20_s11 = sshll.u32 %s284_s0, 4  ;;  %s246_s12 = smov [#allocation2]   ;;  %s21_s11 = int_to_ptr.hbm [resolvable:$true] %s20_s11 }
   0x3   :  { %s22_s13 = sshll.u32 %s246_s12, 4  ;;  %s39_s16 = sshll.u32 %s285_s1, 4  ;;  %s23_s13 = int_to_ptr.vmem [resolvable:$true] %s22_s13  ;;  %s40_s16 = int_to_ptr.hbm [resolvable:$true] %s39_s16 }
   0x4   :  { %s247_s17 = smov 128   ;;  %s248_s18 = smov 8  }
   0x5   :  { %28 = dma.hbm_to_vmem [thread:$0]  %s21_s11, 256, %s23_s13, [#allocation3], %s247_s17, %s247_s17, %s248_s18  }
   0x6   :  { %s249_s19 = smov [#allocation5]  }
   0x7   :  { %s41_s20 = sshll.u32 %s249_s19, 4  ;;  %s42_s20 = int_to_ptr.vmem [resolvable:$true] %s41_s20 }
   0x8   :  { %47 = dma.hbm_to_vmem [thread:$0]  %s40_s16, 256, %s42_s20, [#allocation6], %s247_s17, %s247_s17, %s248_s18  }
   0x9   :  { %240 = dma.done.wait [#allocation3], 256  }
   0xa   :  { %241 = vsyncadd [#allocation3], 4294967040 }
   0xb   :  { %242 = dma.done.wait [#allocation6], 256  }
   0xc   :  { %243 = vsyncadd [#allocation6], 4294967040  ;;  %v77_v0 = vld [vmem:[#allocation2] sm:$0xff]  ;;  %v78_v1 = vld [vmem:[#allocation2 + $0x8] sm:$0xff]  ;;  %s250_s0 = smov [#allocation7]   ;;  %s140_s23 = sshll.u32 %s286_s2, 4  ;;  %s141_s23 = int_to_ptr.hbm [resolvable:$true] %s140_s23 }
   0xd   :  { %v79_v2 = vld [vmem:[#allocation5] sm:$0xff]  ;;  %v80_v3 = vld [vmem:[#allocation5 + $0x8] sm:$0xff]  ;;  %v113_v5 = vadd.f32 %v78_v1, %v77_v0  ;;  %v95_v6 = vadd.f32 1e-06, %v77_v0  ;;  %v96_v9 = vadd.f32 1e-06, %v78_v1 }
   0xe   :  { %vm93_vm0 = vcmp.ge.f32.partialorder %v79_v2, 0.5  ;;  %v109_v4 = vmul.f32 %v79_v2, %v77_v0  ;;  %vm94_vm1 = vcmp.ge.f32.partialorder %v80_v3, 0.5  ;;  %v110_v7 = vmul.f32 %v80_v3, %v78_v1  ;;  %s138_s1 = sshll.u32 %s250_s0, 4  ;;  %s139_s1 = int_to_ptr.vmem [resolvable:$true] %s138_s1 }
   0xf   :  { %v115_v8 = vadd.f32 %v80_v3, %v79_v2  ;;  %v97_v10 = vsub.f32 1.000001, %v77_v0  ;;  %v98_v11 = vsub.f32 1.000001, %v78_v1  ;;  %125 = vst [vmem:[#allocation7 + $0x8] sm:$0xff] %v113_v5 }
  0x10   :  { %v111_v12 = vadd.f32 %v110_v7, %v109_v4 }
  0x11   :  { %v99_v13 = vsel %vm93_vm0, %v95_v6, %v97_v10  ;;  %v100_v14 = vsel %vm94_vm1, %v96_v9, %v98_v11  ;;  %129 = vst [vmem:[#allocation7 + $0x10] sm:$0xff] %v115_v8 }
  0x12   :  { %164 = vlog2.f32 %v99_v13  ;;  %121 = vst [vmem:[#allocation7] sm:$0xff] %v111_v12 }
  0x13   :  { %166 = vlog2.f32 %v100_v14 }
  0x18   :  { %v165_v15 = vpop.eup %164 }
  0x19   :  { %v167_v16 = vpop.eup %166  ;;  %v102_v17 = vmul.f32 0.6931472, %v165_v15 }
  0x1a   :  { %v104_v18 = vmul.f32 0.6931472, %v167_v16 }
  0x1b   :  { %v105_v19 = vsub.f32 0.0, %v102_v17 }
  0x1c   :  { %v106_v20 = vsub.f32 0.0, %v104_v18 }
  0x1e   :  { %v117_v21 = vadd.f32 %v106_v20, %v105_v19 }
  0x20   :  { %133 = vst [vmem:[#allocation7 + $0x18] sm:$0xff] %v117_v21 }
  0x21   :  { %146 = dma.vmem_to_hbm [thread:$0]  %s139_s1, 512, %s141_s23, [#allocation4], %s247_s17, %s247_s17, %s248_s18  }
  0x22   :  { %244 = dma.done.wait [#allocation4], 512  }
  0x23   :  { %245 = vsyncadd [#allocation4], 4294966784 }
  0x24   :  { %151 = vsyncpa [#allocation3], 1 }
  0x25   :  { %152 = vsyncpa [#allocation6], 1 }
  0x26   :  { %153 = vsyncpa [#allocation4], 1 }

</bundles_post_ra>
